<compile_context>
chip_gen: v5e
topology: v5e:2x2
jax: 0.10.0
libtpu: 0.0.40
codegen_flags: <defaults>
</compile_context>

<pallas_src>
import jax
import jax.numpy as jnp
import numpy as np
from jax.experimental import pallas as pl
from jax.experimental.pallas import tpu as pltpu


def _tap_masks(H, W, K, P):
    """(K*K, H*W) float32 of {0,1}: validity of each tap at each output pixel."""
    rows = np.arange(H).reshape(H, 1)
    cols = np.arange(W).reshape(1, W)
    out = []
    for kh in range(K):
        for kw in range(K):
            dh, dw = kh - P, kw - P
            valid = ((rows + dh >= 0) & (rows + dh < H) &
                     (cols + dw >= 0) & (cols + dw < W))
            out.append(valid.reshape(-1))
    return np.stack(out).astype(np.float32)


def _make_kernel(H, W, C, K, P, eps=1e-5):
    HW = H * W
    KK = K * K
    CP = -(-C // 8) * 8                      # per-tap channel rows, padded to sublane multiple
    KKCP = KK * CP
    inv_hw = 1.0 / HW
    # static flat offsets of the K*K taps, tap-major order (kh, kw)
    offs = [(kh - P) * W + (kw - P) for kh in range(K) for kw in range(K)]

    def kernel(x_ref, m_ref, w1_ref, w2_ref, o_ref, pat_sc):
        x = x_ref[0]                                           # (C, HW)
        # zero rows used to pad each tap's channel block to CP sublanes (hoisted once)
        zpad = None if CP == C else jnp.zeros((CP - C, HW), jnp.float32)

        def conv(a, w_ref):
            # im2col via per-tap lane rotation (XLU slot, idle otherwise). roll
            # wraps real finite values, so the 0/1 masks can simply multiply
            # away out-of-image (and row-wrapped) positions.
            for t, off in enumerate(offs):
                if off == 0:
                    s = a                                      # center tap: always valid
                else:
                    s = pltpu.roll(a, shift=(-off) % HW, axis=1) * m_ref[t:t + 1, :]
                blk = s if zpad is None else jnp.concatenate([s, zpad], axis=0)
                pat_sc[t * CP:(t + 1) * CP, :] = blk           # aligned, full (CP, HW) store
            # single fused contraction over all K*K*CP rows (one MXU dot);
            # the CP-C padding rows hit zero weight columns.
            return jnp.dot(w_ref[...], pat_sc[...],
                           preferred_element_type=jnp.float32)

        def inorm(h):
            # InstanceNorm2d (affine=False): per-(sample, channel) mean and
            # biased variance over the spatial (lane) axis, single pass.
            mean = jnp.sum(h, axis=1, keepdims=True) * inv_hw
            var = jnp.sum(h * h, axis=1, keepdims=True) * inv_hw - mean * mean
            var = jnp.maximum(var, 0.0)                        # guard cancellation
            return (h - mean) * jax.lax.rsqrt(var + eps)

        h = jnp.maximum(inorm(conv(x, w1_ref)), 0.0)           # conv1 + IN + ReLU
        y = inorm(conv(h, w2_ref))                             # conv2 + IN
        o_ref[0] = x + y                                       # residual add

    return kernel, CP, KKCP, KK


def _pack_weights(w, C, K, CP):
    """(Cout, Cin, K, K) -> (Cout, K*K*CP): tap-major rows, Cin zero-padded to CP."""
    wt = jnp.transpose(w, (0, 2, 3, 1)).reshape(C, K * K, C)   # (Cout, KK, Cin)
    if CP != C:
        wt = jnp.pad(wt, ((0, 0), (0, 0), (0, CP - C)))
    return wt.reshape(C, K * K * CP).astype(jnp.float32)


def resnet_block_forward(x_nchw, w1, b1, w2, b2, *, kernel_size, stride, padding):
    """x_nchw: (N, C, H, W) float32; conv weights in PyTorch (Cout, Cin, K, K).

    b1/b2 are accepted for signature parity but unused: a per-channel bias
    added right before an affine-less InstanceNorm is exactly cancelled by the
    mean subtraction, so the forward pass is identical without it.
    """
    del b1, b2
    N, C, H, W = x_nchw.shape
    K, P = kernel_size, padding
    # TODO(synk): stride != 1 is not supported -- the residual add in the
    # original module only type-checks for shape-preserving convs anyway.
    assert stride == 1 and H + 2 * P - K + 1 == H and W + 2 * P - K + 1 == W

    HW = H * W
    kernel, CP, KKCP, KK = _make_kernel(H, W, C, K, P)

    x = x_nchw.reshape(N, C, HW).astype(jnp.float32)          # channels-major, free reshape
    masks = jnp.asarray(_tap_masks(H, W, K, P))               # (K*K, HW) {0,1}
    w1k = _pack_weights(w1.astype(jnp.float32), C, K, CP)
    w2k = _pack_weights(w2.astype(jnp.float32), C, K, CP)

    out = pl.pallas_call(
        kernel,
        out_shape=jax.ShapeDtypeStruct((N, C, HW), jnp.float32),
        grid=(N,),
        in_specs=[
            pl.BlockSpec((1, C, HW), lambda n: (n, 0, 0)),    # input / residual
            pl.BlockSpec((KK, HW), lambda n: (0, 0)),         # tap validity masks
            pl.BlockSpec((C, KKCP), lambda n: (0, 0)),        # w1 (padded im2col layout)
            pl.BlockSpec((C, KKCP), lambda n: (0, 0)),        # w2
        ],
        out_specs=pl.BlockSpec((1, C, HW), lambda n: (n, 0, 0)),
        # TODO(synk): at production channel counts pat_sc is ~K*K x the
        # activation size; tile the HW lane axis (or accumulate per tap) and
        # set vmem_limit_bytes before reusing this on v7x's 64 MiB VMEM.
        scratch_shapes=[
            pltpu.VMEM((KKCP, HW), jnp.float32),              # sublane-aligned im2col patches
        ],
        compiler_params=pltpu.CompilerParams(dimension_semantics=("parallel",)),
    )(x, masks, w1k, w2k)
    return out.reshape(N, C, H, W)


def _reference(x_nchw, w1, b1, w2, b2, stride, padding, eps=1e-5):
    def conv(x, w, b):
        y = jax.lax.conv_general_dilated(
            x, w, (stride, stride), [(padding, padding)] * 2,
            dimension_numbers=("NCHW", "OIHW", "NCHW"))
        return y + b.reshape(1, -1, 1, 1)

    def inorm(x):
        mean = jnp.mean(x, axis=(2, 3), keepdims=True)
        var = jnp.mean((x - mean) ** 2, axis=(2, 3), keepdims=True)
        return (x - mean) * jax.lax.rsqrt(var + eps)

    h = jax.nn.relu(inorm(conv(x_nchw, w1, b1)))
    return x_nchw + inorm(conv(h, w2, b2))


if __name__ == "__main__":
    # small shapes consistent with the module: resnet_block(channel=4, kernel=3, stride=1, padding=1)
    N, C, H, W = 2, 4, 16, 16
    K, stride, padding = 3, 1, 1

    key = jax.random.PRNGKey(0)
    kx, kw1, kw2 = jax.random.split(key, 3)
    x = jax.random.normal(kx, (N, C, H, W), dtype=jnp.float32)
    # deterministic init, mimicking normal_(0, 0.02) conv init + zero bias
    w1 = 0.02 * jax.random.normal(kw1, (C, C, K, K), dtype=jnp.float32)
    w2 = 0.02 * jax.random.normal(kw2, (C, C, K, K), dtype=jnp.float32)
    b1 = jnp.zeros((C,), jnp.float32)
    b2 = jnp.zeros((C,), jnp.float32)

    out = resnet_block_forward(x, w1, b1, w2, b2,
                               kernel_size=K, stride=stride, padding=padding)
    out = jax.block_until_ready(out)

    ref = jax.block_until_ready(_reference(x, w1, b1, w2, b2, stride, padding))
    np.testing.assert_allclose(np.asarray(out), np.asarray(ref),
                               rtol=1e-3, atol=1e-3)
    print("KERNEL_OK")
</pallas_src>

<mosaic_0001>
module attributes {stable_mosaic.version = 11 : i64} {
  func.func @kernel(%arg0: i32, %arg1: memref<1x4x256xf32, #tpu.memory_space<vmem>>, %arg2: memref<9x256xf32, #tpu.memory_space<vmem>>, %arg3: memref<4x72xf32, #tpu.memory_space<vmem>>, %arg4: memref<4x72xf32, #tpu.memory_space<vmem>>, %arg5: memref<1x4x256xf32, #tpu.memory_space<vmem>>, %arg6: memref<72x256xf32, #tpu.memory_space<vmem>>) attributes {dimension_semantics = [#tpu.dimension_semantics<parallel>], iteration_bounds = array<i64: 2>, scalar_prefetch = 0 : i64, scratch_operands = 1 : i64, tpu.core_type = #tpu.core_type<tc>, window_params = [{transform_indices = @transform_0, window_bounds = array<i64: 1, 4, 256>}, {pipeline_mode = #tpu.pipeline_mode<synchronous>, transform_indices = @transform_1, window_bounds = array<i64: 9, 256>}, {pipeline_mode = #tpu.pipeline_mode<synchronous>, transform_indices = @transform_2, window_bounds = array<i64: 4, 72>}, {pipeline_mode = #tpu.pipeline_mode<synchronous>, transform_indices = @transform_3, window_bounds = array<i64: 4, 72>}, {transform_indices = @transform_4, window_bounds = array<i64: 1, 4, 256>}]} {
    %c0 = arith.constant 0 : index
    %c0_0 = arith.constant 0 : index
    %c0_1 = arith.constant 0 : index
    %0 = vector.load %arg1[%c0, %c0_0, %c0_1] : memref<1x4x256xf32, #tpu.memory_space<vmem>>, vector<1x4x256xf32>
    %1 = vector.shape_cast %0 : vector<1x4x256xf32> to vector<4x256xf32>
    %cst = arith.constant 0.000000e+00 : f32
    %2 = vector.broadcast %cst : f32 to vector<4x256xf32>
    %c17_i32 = arith.constant 17 : i32
    %3 = tpu.dynamic_rotate %1 by %c17_i32 dim 1 : vector<4x256xf32>, i32 -> vector<4x256xf32>
    %c0_2 = arith.constant 0 : index
    %c0_3 = arith.constant 0 : index
    %4 = vector.load %arg2[%c0_2, %c0_3] : memref<9x256xf32, #tpu.memory_space<vmem>>, vector<1x256xf32>
    %5 = vector.broadcast %4 : vector<1x256xf32> to vector<4x256xf32>
    %6 = arith.mulf %3, %5 : vector<4x256xf32>
    %7 = tpu.concatenate %6, %2 in 0 : vector<4x256xf32>, vector<4x256xf32> -> vector<8x256xf32>
    %c0_4 = arith.constant 0 : index
    %c0_5 = arith.constant 0 : index
    %8 = vector.load %arg6[%c0_4, %c0_5] : memref<72x256xf32, #tpu.memory_space<vmem>>, vector<8x256xf32>
    tpu.vector_store %arg6[%c0_4, %c0_5], %7 {strides = array<i32>} : memref<72x256xf32, #tpu.memory_space<vmem>>, vector<8x256xf32>,
    %c16_i32 = arith.constant 16 : i32
    %9 = tpu.dynamic_rotate %1 by %c16_i32 dim 1 : vector<4x256xf32>, i32 -> vector<4x256xf32>
    %c1 = arith.constant 1 : index
    %c0_6 = arith.constant 0 : index
    %10 = vector.load %arg2[%c1, %c0_6] : memref<9x256xf32, #tpu.memory_space<vmem>>, vector<1x256xf32>
    %11 = vector.broadcast %10 : vector<1x256xf32> to vector<4x256xf32>
    %12 = arith.mulf %9, %11 : vector<4x256xf32>
    %13 = tpu.concatenate %12, %2 in 0 : vector<4x256xf32>, vector<4x256xf32> -> vector<8x256xf32>
    %c8 = arith.constant 8 : index
    %c0_7 = arith.constant 0 : index
    %14 = vector.load %arg6[%c8, %c0_7] : memref<72x256xf32, #tpu.memory_space<vmem>>, vector<8x256xf32>
    tpu.vector_store %arg6[%c8, %c0_7], %13 {strides = array<i32>} : memref<72x256xf32, #tpu.memory_space<vmem>>, vector<8x256xf32>,
    %c15_i32 = arith.constant 15 : i32
    %15 = tpu.dynamic_rotate %1 by %c15_i32 dim 1 : vector<4x256xf32>, i32 -> vector<4x256xf32>
    %c2 = arith.constant 2 : index
    %c0_8 = arith.constant 0 : index
    %16 = vector.load %arg2[%c2, %c0_8] : memref<9x256xf32, #tpu.memory_space<vmem>>, vector<1x256xf32>
    %17 = vector.broadcast %16 : vector<1x256xf32> to vector<4x256xf32>
    %18 = arith.mulf %15, %17 : vector<4x256xf32>
    %19 = tpu.concatenate %18, %2 in 0 : vector<4x256xf32>, vector<4x256xf32> -> vector<8x256xf32>
    %c16 = arith.constant 16 : index
    %c0_9 = arith.constant 0 : index
    %20 = vector.load %arg6[%c16, %c0_9] : memref<72x256xf32, #tpu.memory_space<vmem>>, vector<8x256xf32>
    tpu.vector_store %arg6[%c16, %c0_9], %19 {strides = array<i32>} : memref<72x256xf32, #tpu.memory_space<vmem>>, vector<8x256xf32>,
    %c1_i32 = arith.constant 1 : i32
    %21 = tpu.dynamic_rotate %1 by %c1_i32 dim 1 : vector<4x256xf32>, i32 -> vector<4x256xf32>
    %c3 = arith.constant 3 : index
    %c0_10 = arith.constant 0 : index
    %22 = vector.load %arg2[%c3, %c0_10] : memref<9x256xf32, #tpu.memory_space<vmem>>, vector<1x256xf32>
    %23 = vector.broadcast %22 : vector<1x256xf32> to vector<4x256xf32>
    %24 = arith.mulf %21, %23 : vector<4x256xf32>
    %25 = tpu.concatenate %24, %2 in 0 : vector<4x256xf32>, vector<4x256xf32> -> vector<8x256xf32>
    %c24 = arith.constant 24 : index
    %c0_11 = arith.constant 0 : index
    %26 = vector.load %arg6[%c24, %c0_11] : memref<72x256xf32, #tpu.memory_space<vmem>>, vector<8x256xf32>
    tpu.vector_store %arg6[%c24, %c0_11], %25 {strides = array<i32>} : memref<72x256xf32, #tpu.memory_space<vmem>>, vector<8x256xf32>,
    %27 = tpu.concatenate %1, %2 in 0 : vector<4x256xf32>, vector<4x256xf32> -> vector<8x256xf32>
    %c32 = arith.constant 32 : index
    %c0_12 = arith.constant 0 : index
    %28 = vector.load %arg6[%c32, %c0_12] : memref<72x256xf32, #tpu.memory_space<vmem>>, vector<8x256xf32>
    tpu.vector_store %arg6[%c32, %c0_12], %27 {strides = array<i32>} : memref<72x256xf32, #tpu.memory_space<vmem>>, vector<8x256xf32>,
    %c255_i32 = arith.constant 255 : i32
    %29 = tpu.dynamic_rotate %1 by %c255_i32 dim 1 : vector<4x256xf32>, i32 -> vector<4x256xf32>
    %c5 = arith.constant 5 : index
    %c0_13 = arith.constant 0 : index
    %30 = vector.load %arg2[%c5, %c0_13] : memref<9x256xf32, #tpu.memory_space<vmem>>, vector<1x256xf32>
    %31 = vector.broadcast %30 : vector<1x256xf32> to vector<4x256xf32>
    %32 = arith.mulf %29, %31 : vector<4x256xf32>
    %33 = tpu.concatenate %32, %2 in 0 : vector<4x256xf32>, vector<4x256xf32> -> vector<8x256xf32>
    %c40 = arith.constant 40 : index
    %c0_14 = arith.constant 0 : index
    %34 = vector.load %arg6[%c40, %c0_14] : memref<72x256xf32, #tpu.memory_space<vmem>>, vector<8x256xf32>
    tpu.vector_store %arg6[%c40, %c0_14], %33 {strides = array<i32>} : memref<72x256xf32, #tpu.memory_space<vmem>>, vector<8x256xf32>,
    %c241_i32 = arith.constant 241 : i32
    %35 = tpu.dynamic_rotate %1 by %c241_i32 dim 1 : vector<4x256xf32>, i32 -> vector<4x256xf32>
    %c6 = arith.constant 6 : index
    %c0_15 = arith.constant 0 : index
    %36 = vector.load %arg2[%c6, %c0_15] : memref<9x256xf32, #tpu.memory_space<vmem>>, vector<1x256xf32>
    %37 = vector.broadcast %36 : vector<1x256xf32> to vector<4x256xf32>
    %38 = arith.mulf %35, %37 : vector<4x256xf32>
    %39 = tpu.concatenate %38, %2 in 0 : vector<4x256xf32>, vector<4x256xf32> -> vector<8x256xf32>
    %c48 = arith.constant 48 : index
    %c0_16 = arith.constant 0 : index
    %40 = vector.load %arg6[%c48, %c0_16] : memref<72x256xf32, #tpu.memory_space<vmem>>, vector<8x256xf32>
    tpu.vector_store %arg6[%c48, %c0_16], %39 {strides = array<i32>} : memref<72x256xf32, #tpu.memory_space<vmem>>, vector<8x256xf32>,
    %c240_i32 = arith.constant 240 : i32
    %41 = tpu.dynamic_rotate %1 by %c240_i32 dim 1 : vector<4x256xf32>, i32 -> vector<4x256xf32>
    %c7 = arith.constant 7 : index
    %c0_17 = arith.constant 0 : index
    %42 = vector.load %arg2[%c7, %c0_17] : memref<9x256xf32, #tpu.memory_space<vmem>>, vector<1x256xf32>
    %43 = vector.broadcast %42 : vector<1x256xf32> to vector<4x256xf32>
    %44 = arith.mulf %41, %43 : vector<4x256xf32>
    %45 = tpu.concatenate %44, %2 in 0 : vector<4x256xf32>, vector<4x256xf32> -> vector<8x256xf32>
    %c56 = arith.constant 56 : index
    %c0_18 = arith.constant 0 : index
    %46 = vector.load %arg6[%c56, %c0_18] : memref<72x256xf32, #tpu.memory_space<vmem>>, vector<8x256xf32>
    tpu.vector_store %arg6[%c56, %c0_18], %45 {strides = array<i32>} : memref<72x256xf32, #tpu.memory_space<vmem>>, vector<8x256xf32>,
    %c239_i32 = arith.constant 239 : i32
    %47 = tpu.dynamic_rotate %1 by %c239_i32 dim 1 : vector<4x256xf32>, i32 -> vector<4x256xf32>
    %c8_19 = arith.constant 8 : index
    %c0_20 = arith.constant 0 : index
    %48 = vector.load %arg2[%c8_19, %c0_20] : memref<9x256xf32, #tpu.memory_space<vmem>>, vector<1x256xf32>
    %49 = vector.broadcast %48 : vector<1x256xf32> to vector<4x256xf32>
    %50 = arith.mulf %47, %49 : vector<4x256xf32>
    %51 = tpu.concatenate %50, %2 in 0 : vector<4x256xf32>, vector<4x256xf32> -> vector<8x256xf32>
    %c64 = arith.constant 64 : index
    %c0_21 = arith.constant 0 : index
    %52 = vector.load %arg6[%c64, %c0_21] : memref<72x256xf32, #tpu.memory_space<vmem>>, vector<8x256xf32>
    tpu.vector_store %arg6[%c64, %c0_21], %51 {strides = array<i32>} : memref<72x256xf32, #tpu.memory_space<vmem>>, vector<8x256xf32>,
    %c0_22 = arith.constant 0 : index
    %c0_23 = arith.constant 0 : index
    %53 = vector.load %arg3[%c0_22, %c0_23] : memref<4x72xf32, #tpu.memory_space<vmem>>, vector<4x72xf32>
    %c0_24 = arith.constant 0 : index
    %c0_25 = arith.constant 0 : index
    %54 = vector.load %arg6[%c0_24, %c0_25] : memref<72x256xf32, #tpu.memory_space<vmem>>, vector<72x256xf32>
    %cst_26 = arith.constant dense<0.000000e+00> : vector<4x256xf32>
    %55 = tpu.matmul %53, %54, %cst_26 {dimension_numbers = #tpu.dot_dimension_numbers<[1], [0], [0], [1], [0, 0, 1, 1], [], []>} : vector<4x72xf32>, vector<72x256xf32>, vector<4x256xf32> -> vector<4x256xf32>
    %cst_27 = arith.constant dense<0.000000e+00> : vector<4xf32>
    %56 = vector.multi_reduction <add>, %55, %cst_27 [1] : vector<4x256xf32> to vector<4xf32>
    %57 = vector.shape_cast %56 : vector<4xf32> to vector<4x1xf32>
    %cst_28 = arith.constant 3.906250e-03 : f32
    %58 = vector.broadcast %cst_28 : f32 to vector<4x1xf32>
    %59 = arith.mulf %57, %58 : vector<4x1xf32>
    %60 = arith.mulf %55, %55 : vector<4x256xf32>
    %cst_29 = arith.constant dense<0.000000e+00> : vector<4xf32>
    %61 = vector.multi_reduction <add>, %60, %cst_29 [1] : vector<4x256xf32> to vector<4xf32>
    %62 = vector.shape_cast %61 : vector<4xf32> to vector<4x1xf32>
    %cst_30 = arith.constant 3.906250e-03 : f32
    %63 = vector.broadcast %cst_30 : f32 to vector<4x1xf32>
    %64 = arith.mulf %62, %63 : vector<4x1xf32>
    %65 = arith.mulf %59, %59 : vector<4x1xf32>
    %66 = arith.subf %64, %65 : vector<4x1xf32>
    %cst_31 = arith.constant 0.000000e+00 : f32
    %67 = vector.broadcast %cst_31 : f32 to vector<4x1xf32>
    %68 = arith.maximumf %66, %67 : vector<4x1xf32>
    %69 = vector.broadcast %59 : vector<4x1xf32> to vector<4x256xf32>
    %70 = arith.subf %55, %69 : vector<4x256xf32>
    %cst_32 = arith.constant 9.99999974E-6 : f32
    %71 = vector.broadcast %cst_32 : f32 to vector<4x1xf32>
    %72 = arith.addf %68, %71 : vector<4x1xf32>
    %73 = math.rsqrt %72 : vector<4x1xf32>
    %74 = vector.broadcast %73 : vector<4x1xf32> to vector<4x256xf32>
    %75 = arith.mulf %70, %74 : vector<4x256xf32>
    %cst_33 = arith.constant 0.000000e+00 : f32
    %76 = vector.broadcast %cst_33 : f32 to vector<4x256xf32>
    %77 = arith.maximumf %75, %76 : vector<4x256xf32>
    %c17_i32_34 = arith.constant 17 : i32
    %78 = tpu.dynamic_rotate %77 by %c17_i32_34 dim 1 : vector<4x256xf32>, i32 -> vector<4x256xf32>
    %c0_35 = arith.constant 0 : index
    %c0_36 = arith.constant 0 : index
    %79 = vector.load %arg2[%c0_35, %c0_36] : memref<9x256xf32, #tpu.memory_space<vmem>>, vector<1x256xf32>
    %80 = vector.broadcast %79 : vector<1x256xf32> to vector<4x256xf32>
    %81 = arith.mulf %78, %80 : vector<4x256xf32>
    %82 = tpu.concatenate %81, %2 in 0 : vector<4x256xf32>, vector<4x256xf32> -> vector<8x256xf32>
    %c0_37 = arith.constant 0 : index
    %c0_38 = arith.constant 0 : index
    %83 = vector.load %arg6[%c0_37, %c0_38] : memref<72x256xf32, #tpu.memory_space<vmem>>, vector<8x256xf32>
    tpu.vector_store %arg6[%c0_37, %c0_38], %82 {strides = array<i32>} : memref<72x256xf32, #tpu.memory_space<vmem>>, vector<8x256xf32>,
    %c16_i32_39 = arith.constant 16 : i32
    %84 = tpu.dynamic_rotate %77 by %c16_i32_39 dim 1 : vector<4x256xf32>, i32 -> vector<4x256xf32>
    %c1_40 = arith.constant 1 : index
    %c0_41 = arith.constant 0 : index
    %85 = vector.load %arg2[%c1_40, %c0_41] : memref<9x256xf32, #tpu.memory_space<vmem>>, vector<1x256xf32>
    %86 = vector.broadcast %85 : vector<1x256xf32> to vector<4x256xf32>
    %87 = arith.mulf %84, %86 : vector<4x256xf32>
    %88 = tpu.concatenate %87, %2 in 0 : vector<4x256xf32>, vector<4x256xf32> -> vector<8x256xf32>
    %c8_42 = arith.constant 8 : index
    %c0_43 = arith.constant 0 : index
    %89 = vector.load %arg6[%c8_42, %c0_43] : memref<72x256xf32, #tpu.memory_space<vmem>>, vector<8x256xf32>
    tpu.vector_store %arg6[%c8_42, %c0_43], %88 {strides = array<i32>} : memref<72x256xf32, #tpu.memory_space<vmem>>, vector<8x256xf32>,
    %c15_i32_44 = arith.constant 15 : i32
    %90 = tpu.dynamic_rotate %77 by %c15_i32_44 dim 1 : vector<4x256xf32>, i32 -> vector<4x256xf32>
    %c2_45 = arith.constant 2 : index
    %c0_46 = arith.constant 0 : index
    %91 = vector.load %arg2[%c2_45, %c0_46] : memref<9x256xf32, #tpu.memory_space<vmem>>, vector<1x256xf32>
    %92 = vector.broadcast %91 : vector<1x256xf32> to vector<4x256xf32>
    %93 = arith.mulf %90, %92 : vector<4x256xf32>
    %94 = tpu.concatenate %93, %2 in 0 : vector<4x256xf32>, vector<4x256xf32> -> vector<8x256xf32>
    %c16_47 = arith.constant 16 : index
    %c0_48 = arith.constant 0 : index
    %95 = vector.load %arg6[%c16_47, %c0_48] : memref<72x256xf32, #tpu.memory_space<vmem>>, vector<8x256xf32>
    tpu.vector_store %arg6[%c16_47, %c0_48], %94 {strides = array<i32>} : memref<72x256xf32, #tpu.memory_space<vmem>>, vector<8x256xf32>,
    %c1_i32_49 = arith.constant 1 : i32
    %96 = tpu.dynamic_rotate %77 by %c1_i32_49 dim 1 : vector<4x256xf32>, i32 -> vector<4x256xf32>
    %c3_50 = arith.constant 3 : index
    %c0_51 = arith.constant 0 : index
    %97 = vector.load %arg2[%c3_50, %c0_51] : memref<9x256xf32, #tpu.memory_space<vmem>>, vector<1x256xf32>
    %98 = vector.broadcast %97 : vector<1x256xf32> to vector<4x256xf32>
    %99 = arith.mulf %96, %98 : vector<4x256xf32>
    %100 = tpu.concatenate %99, %2 in 0 : vector<4x256xf32>, vector<4x256xf32> -> vector<8x256xf32>
    %c24_52 = arith.constant 24 : index
    %c0_53 = arith.constant 0 : index
    %101 = vector.load %arg6[%c24_52, %c0_53] : memref<72x256xf32, #tpu.memory_space<vmem>>, vector<8x256xf32>
    tpu.vector_store %arg6[%c24_52, %c0_53], %100 {strides = array<i32>} : memref<72x256xf32, #tpu.memory_space<vmem>>, vector<8x256xf32>,
    %102 = tpu.concatenate %77, %2 in 0 : vector<4x256xf32>, vector<4x256xf32> -> vector<8x256xf32>
    %c32_54 = arith.constant 32 : index
    %c0_55 = arith.constant 0 : index
    %103 = vector.load %arg6[%c32_54, %c0_55] : memref<72x256xf32, #tpu.memory_space<vmem>>, vector<8x256xf32>
    tpu.vector_store %arg6[%c32_54, %c0_55], %102 {strides = array<i32>} : memref<72x256xf32, #tpu.memory_space<vmem>>, vector<8x256xf32>,
    %c255_i32_56 = arith.constant 255 : i32
    %104 = tpu.dynamic_rotate %77 by %c255_i32_56 dim 1 : vector<4x256xf32>, i32 -> vector<4x256xf32>
    %c5_57 = arith.constant 5 : index
    %c0_58 = arith.constant 0 : index
    %105 = vector.load %arg2[%c5_57, %c0_58] : memref<9x256xf32, #tpu.memory_space<vmem>>, vector<1x256xf32>
    %106 = vector.broadcast %105 : vector<1x256xf32> to vector<4x256xf32>
    %107 = arith.mulf %104, %106 : vector<4x256xf32>
    %108 = tpu.concatenate %107, %2 in 0 : vector<4x256xf32>, vector<4x256xf32> -> vector<8x256xf32>
    %c40_59 = arith.constant 40 : index
    %c0_60 = arith.constant 0 : index
    %109 = vector.load %arg6[%c40_59, %c0_60] : memref<72x256xf32, #tpu.memory_space<vmem>>, vector<8x256xf32>
    tpu.vector_store %arg6[%c40_59, %c0_60], %108 {strides = array<i32>} : memref<72x256xf32, #tpu.memory_space<vmem>>, vector<8x256xf32>,
    %c241_i32_61 = arith.constant 241 : i32
    %110 = tpu.dynamic_rotate %77 by %c241_i32_61 dim 1 : vector<4x256xf32>, i32 -> vector<4x256xf32>
    %c6_62 = arith.constant 6 : index
    %c0_63 = arith.constant 0 : index
    %111 = vector.load %arg2[%c6_62, %c0_63] : memref<9x256xf32, #tpu.memory_space<vmem>>, vector<1x256xf32>
    %112 = vector.broadcast %111 : vector<1x256xf32> to vector<4x256xf32>
    %113 = arith.mulf %110, %112 : vector<4x256xf32>
    %114 = tpu.concatenate %113, %2 in 0 : vector<4x256xf32>, vector<4x256xf32> -> vector<8x256xf32>
    %c48_64 = arith.constant 48 : index
    %c0_65 = arith.constant 0 : index
    %115 = vector.load %arg6[%c48_64, %c0_65] : memref<72x256xf32, #tpu.memory_space<vmem>>, vector<8x256xf32>
    tpu.vector_store %arg6[%c48_64, %c0_65], %114 {strides = array<i32>} : memref<72x256xf32, #tpu.memory_space<vmem>>, vector<8x256xf32>,
    %c240_i32_66 = arith.constant 240 : i32
    %116 = tpu.dynamic_rotate %77 by %c240_i32_66 dim 1 : vector<4x256xf32>, i32 -> vector<4x256xf32>
    %c7_67 = arith.constant 7 : index
    %c0_68 = arith.constant 0 : index
    %117 = vector.load %arg2[%c7_67, %c0_68] : memref<9x256xf32, #tpu.memory_space<vmem>>, vector<1x256xf32>
    %118 = vector.broadcast %117 : vector<1x256xf32> to vector<4x256xf32>
    %119 = arith.mulf %116, %118 : vector<4x256xf32>
    %120 = tpu.concatenate %119, %2 in 0 : vector<4x256xf32>, vector<4x256xf32> -> vector<8x256xf32>
    %c56_69 = arith.constant 56 : index
    %c0_70 = arith.constant 0 : index
    %121 = vector.load %arg6[%c56_69, %c0_70] : memref<72x256xf32, #tpu.memory_space<vmem>>, vector<8x256xf32>
    tpu.vector_store %arg6[%c56_69, %c0_70], %120 {strides = array<i32>} : memref<72x256xf32, #tpu.memory_space<vmem>>, vector<8x256xf32>,
    %c239_i32_71 = arith.constant 239 : i32
    %122 = tpu.dynamic_rotate %77 by %c239_i32_71 dim 1 : vector<4x256xf32>, i32 -> vector<4x256xf32>
    %c8_72 = arith.constant 8 : index
    %c0_73 = arith.constant 0 : index
    %123 = vector.load %arg2[%c8_72, %c0_73] : memref<9x256xf32, #tpu.memory_space<vmem>>, vector<1x256xf32>
    %124 = vector.broadcast %123 : vector<1x256xf32> to vector<4x256xf32>
    %125 = arith.mulf %122, %124 : vector<4x256xf32>
    %126 = tpu.concatenate %125, %2 in 0 : vector<4x256xf32>, vector<4x256xf32> -> vector<8x256xf32>
    %c64_74 = arith.constant 64 : index
    %c0_75 = arith.constant 0 : index
    %127 = vector.load %arg6[%c64_74, %c0_75] : memref<72x256xf32, #tpu.memory_space<vmem>>, vector<8x256xf32>
    tpu.vector_store %arg6[%c64_74, %c0_75], %126 {strides = array<i32>} : memref<72x256xf32, #tpu.memory_space<vmem>>, vector<8x256xf32>,
    %c0_76 = arith.constant 0 : index
    %c0_77 = arith.constant 0 : index
    %128 = vector.load %arg4[%c0_76, %c0_77] : memref<4x72xf32, #tpu.memory_space<vmem>>, vector<4x72xf32>
    %c0_78 = arith.constant 0 : index
    %c0_79 = arith.constant 0 : index
    %129 = vector.load %arg6[%c0_78, %c0_79] : memref<72x256xf32, #tpu.memory_space<vmem>>, vector<72x256xf32>
    %cst_80 = arith.constant dense<0.000000e+00> : vector<4x256xf32>
    %130 = tpu.matmul %128, %129, %cst_80 {dimension_numbers = #tpu.dot_dimension_numbers<[1], [0], [0], [1], [0, 0, 1, 1], [], []>} : vector<4x72xf32>, vector<72x256xf32>, vector<4x256xf32> -> vector<4x256xf32>
    %cst_81 = arith.constant dense<0.000000e+00> : vector<4xf32>
    %131 = vector.multi_reduction <add>, %130, %cst_81 [1] : vector<4x256xf32> to vector<4xf32>
    %132 = vector.shape_cast %131 : vector<4xf32> to vector<4x1xf32>
    %cst_82 = arith.constant 3.906250e-03 : f32
    %133 = vector.broadcast %cst_82 : f32 to vector<4x1xf32>
    %134 = arith.mulf %132, %133 : vector<4x1xf32>
    %135 = arith.mulf %130, %130 : vector<4x256xf32>
    %cst_83 = arith.constant dense<0.000000e+00> : vector<4xf32>
    %136 = vector.multi_reduction <add>, %135, %cst_83 [1] : vector<4x256xf32> to vector<4xf32>
    %137 = vector.shape_cast %136 : vector<4xf32> to vector<4x1xf32>
    %cst_84 = arith.constant 3.906250e-03 : f32
    %138 = vector.broadcast %cst_84 : f32 to vector<4x1xf32>
    %139 = arith.mulf %137, %138 : vector<4x1xf32>
    %140 = arith.mulf %134, %134 : vector<4x1xf32>
    %141 = arith.subf %139, %140 : vector<4x1xf32>
    %cst_85 = arith.constant 0.000000e+00 : f32
    %142 = vector.broadcast %cst_85 : f32 to vector<4x1xf32>
    %143 = arith.maximumf %141, %142 : vector<4x1xf32>
    %144 = vector.broadcast %134 : vector<4x1xf32> to vector<4x256xf32>
    %145 = arith.subf %130, %144 : vector<4x256xf32>
    %cst_86 = arith.constant 9.99999974E-6 : f32
    %146 = vector.broadcast %cst_86 : f32 to vector<4x1xf32>
    %147 = arith.addf %143, %146 : vector<4x1xf32>
    %148 = math.rsqrt %147 : vector<4x1xf32>
    %149 = vector.broadcast %148 : vector<4x1xf32> to vector<4x256xf32>
    %150 = arith.mulf %145, %149 : vector<4x256xf32>
    %151 = arith.addf %1, %150 : vector<4x256xf32>
    %c0_87 = arith.constant 0 : index
    %c0_88 = arith.constant 0 : index
    %c0_89 = arith.constant 0 : index
    %152 = vector.load %arg5[%c0_87, %c0_88, %c0_89] : memref<1x4x256xf32, #tpu.memory_space<vmem>>, vector<1x4x256xf32>
    %153 = vector.shape_cast %152 : vector<1x4x256xf32> to vector<4x256xf32>
    %154 = vector.shape_cast %151 : vector<4x256xf32> to vector<1x4x256xf32>
    tpu.vector_store %arg5[%c0_87, %c0_88, %c0_89], %154 {strides = array<i32>} : memref<1x4x256xf32, #tpu.memory_space<vmem>>, vector<1x4x256xf32>,
    return
  }
  func.func @transform_0(%arg0: i32) -> (i32, i32, i32) {
    %c0_i32 = arith.constant 0 : i32
    %c0_i32_0 = arith.constant 0 : i32
    %c0_i32_1 = arith.constant 0 : i32
    return %arg0, %c0_i32, %c0_i32_0 : i32, i32, i32
  }
  func.func @transform_1(%arg0: i32) -> (i32, i32) {
    %c0_i32 = arith.constant 0 : i32
    %c0_i32_0 = arith.constant 0 : i32
    %c0_i32_1 = arith.constant 0 : i32
    return %c0_i32, %c0_i32_0 : i32, i32
  }
  func.func @transform_2(%arg0: i32) -> (i32, i32) {
    %c0_i32 = arith.constant 0 : i32
    %c0_i32_0 = arith.constant 0 : i32
    %c0_i32_1 = arith.constant 0 : i32
    return %c0_i32, %c0_i32_0 : i32, i32
  }
  func.func @transform_3(%arg0: i32) -> (i32, i32) {
    %c0_i32 = arith.constant 0 : i32
    %c0_i32_0 = arith.constant 0 : i32
    %c0_i32_1 = arith.constant 0 : i32
    return %c0_i32, %c0_i32_0 : i32, i32
  }
  func.func @transform_4(%arg0: i32) -> (i32, i32, i32) {
    %c0_i32 = arith.constant 0 : i32
    %c0_i32_0 = arith.constant 0 : i32
    %c0_i32_1 = arith.constant 0 : i32
    return %arg0, %c0_i32, %c0_i32_0 : i32, i32, i32
  }
}

</mosaic_0001>

<bundles_post_ra>
// kernel: tpu_custom_call.1
= control target key start
LH: loop header
LB: loop body
LE: loop exit
PB: predicated region body
PF: predicated region fallthrough
CT: control target
= control target key end

     0   :  { %9 = vsyncpa [#allocation4], 0  ;;  %s1657_s0 = inlined_call_operand.hbm [shape: f32[2,4,256], index: 0, kind: input, shape index: {}]   ;;  %s1658_s1 = inlined_call_operand.hbm [shape: f32[9,256], index: 1, kind: input, shape index: {}]   ;;  %s1659_s2 = inlined_call_operand.hbm [shape: f32[4,72], index: 2, kind: input, shape index: {}]   ;;  %s1660_s3 = inlined_call_operand.hbm [shape: f32[4,72], index: 3, kind: input, shape index: {}]   ;;  %s1661_s4 = inlined_call_operand.hbm [shape: f32[2,4,256], index: 4, kind: output, shape index: {}]  }
   0x1   :  { %11 = vsyncpa [#allocation4 + $0x1], 0 }
   0x2   :  { %12 = vsyncpa [#allocation7], 0 }
   0x3   :  { %13 = vsyncpa [#allocation10], 0 }
   0x4   :  { %14 = vsyncpa [#allocation5], 0 }
   0x5   :  { %16 = vsyncpa [#allocation5 + $0x1], 0  ;;  %s1324_s15 = smov 0   ;;  %s1326_s16 = smov 0  }
   0x6   :  { %s1328_s17 = smov 0   ;;  %s1330_s18 = smov 0  }
   0x7 LB: > { %s153_s21 = sshll.u32 %s1658_s1, 4  ;;  %s1348_s22 = sadd.s32 4294967295, %s1284_s18   ;;  %s1284_s18 = sphi %s1330_s18, %s1672_s18   ;;  %s1280_s17 = sphi %s1328_s17, %s1671_s17   ;;  %s1276_s16 = sphi %s1326_s16, %s1670_s16   ;;  %s1272_s15 = sphi %s1324_s15, %s1669_s15   ;;  %s154_s21 = int_to_ptr.hbm [resolvable:$true] %s153_s21 }
   0x8   : > { %p938_p0 = scmp.ge.s32.totalorder %s1284_s18, 1  ;;  %p43_p1 = scmp.eq.s32.totalorder %s1348_s22, 0 }
   0x9   : > { %p142_p2 = scmp.lt.s32.totalorder %s1284_s18, 3  ;;  %s1286_s24 = smov [#allocation6]  }
   0xa   : > { %s155_s25 = sshll.u32 %s1286_s24, 4  ;;  %s168_s28 = sshll.u32 %s1659_s2, 4  ;;  %s156_s25 = int_to_ptr.vmem [resolvable:$true] %s155_s25  ;;  %s169_s28 = int_to_ptr.hbm [resolvable:$true] %s168_s28 }
   0xb   : > { %p1353_p3 = pnand %p938_p0, %p142_p2  ;;  %s180_s6 = sshll.u32 %s1660_s3, 4  ;;  %s181_s6 = int_to_ptr.hbm [resolvable:$true] %s180_s6 }
   0xc   : > { %s1287_s7 = smov [#allocation8]   ;;  %s1288_s9 = smov 256  }
   0xd   : > { %p1015_p4 = pneg %p1353_p3  ;;  %s170_s8 = sshll.u32 %s1287_s7, 4  ;;  %s171_s8 = int_to_ptr.vmem [resolvable:$true] %s170_s8 }
   0xe   : > { %s1289_s10 = smov 16   ;;  %s1290_s11 = smov [#allocation9]  }
   0xf   : > { %p1365_p6 = pnand %p1015_p4, %p43_p1  ;;  %s182_s12 = sshll.u32 %s1290_s11, 4  ;;  %s183_s12 = int_to_ptr.vmem [resolvable:$true] %s182_s12 }
  0x10   : > { %s937_s13 = sadd.s32 4294967294, %s1284_s18   ;;  %s1380_s14 = sadd.s32 1, %s1284_s18  }
  0x11   : > { %1018 = dma.hbm_to_vmem [thread:$0]  (!%p1365_p6), %s154_s21, 512, %s156_s25, [#allocation7], %s1288_s9, %s1288_s9, %s1289_s10  }
  0x12   : > { %1021 = dma.hbm_to_vmem [thread:$0]  (!%p1365_p6), %s169_s28, 64, %s171_s8, [#allocation7]  }
  0x13   : > { %1024 = dma.hbm_to_vmem [thread:$0]  (!%p1365_p6), %s181_s6, 64, %s183_s12, [#allocation10]  }
  0x14   : > { %s29_s19 = sadd.s32 1, %s1280_s17  ;;  %s26_s20 = ssub.s32 %s1284_s18, %s1380_s14 }
  0x15   : > { %p36_p7 = scmp.ne.s32.totalorder %s1280_s17, %s1276_s16  ;;  %p27_p8 = scmp.eq.s32.totalorder %s26_s20, 0 }
  0x16   : > { %p37_p9 = scmp.eq.s32.totalorder %s1284_s18, 0  ;;  %p42_p10 = scmp.ne.s32.totalorder %s1276_s16, %s1272_s15 }
  0x17   : > { %p129_p11 = scmp.eq.s32.totalorder %s1348_s22, 1  ;;  %p135_p0 = scmp.eq.s32.totalorder %s937_s13, 1 }
  0x18   : > { %s1392_s21 = scalar_select %p27_p8, %s1280_s17, %s29_s19  }
  0x19   : > { %p1396_p12 = por %p43_p1, %p42_p10  ;;  %p1400_p13 = por %p129_p11, %p36_p7 }
  0x1a   : > { %p38_p2 = por %p37_p9, %p36_p7  ;;  %s193_s26 = sand.u32 1, %s1280_s17  }
  0x1b   : > { %p1405_p4 = por %p135_p0, %p42_p10  ;;  %p1036_p6 = scmp.lt.s32.totalorder %s1284_s18, 2 }
  0x1c   : > { %s943_s28 = sshll.u32 %s193_s26, 3  ;;  %s961_s29 = sshll.u32 %s1284_s18, 3 }
  0x1d   : > { %s202_s6 = scalar_lea.hbm %s1657_s0, %s961_s29  ;;  %s197_s8 = scalar_lea.vmem [#allocation3], %s943_s28 }
  0x1e   : > { %s204_s7 = sshll.u32 %s202_s6, 4  ;;  %s206_s9 = sshll.u32 %s197_s8, 4  ;;  %s205_s7 = int_to_ptr.hbm [resolvable:$true] %s204_s7  ;;  %s207_s9 = int_to_ptr.vmem [resolvable:$true] %s206_s9 }
  0x1f   : > { %p1414_p8 = pnand %p1036_p6, %p38_p2  ;;  %s194_s11 = scalar_lea.sflag [#allocation4], %s193_s26 }
  0x20   : > { %s1180_s12 = sshra.s32 %s205_s7, 4  ;;  %s1187_s28 = scalar_lea.hbm %s1657_s0, 16  ;;  %s1181_s12 = int_to_ptr.hbm [resolvable:$true] %s1180_s12 }
  0x21   : > { %s1182_s13 = scalar_lea.hbm %s1181_s12, 8  ;;  %p1184_p9 = pneg %p1414_p8 }
  0x22   : > { %p1183_p7 = scmp.ne.s32.totalorder %s1181_s12, %s1182_s13  ;;  %p1188_p0 = scmp.lt.s32.totalorder %s1181_s12, %s1657_s0 }
  0x23   : > { %p1189_p2 = scmp.lt.s32.totalorder %s1187_s28, %s1182_s13 }
  0x24   : > { %p1185_p10 = pnand %p1184_p9, %p1183_p7 }
  0x25   : > { %p1190_p6 = por %p1189_p2, %p1188_p0 }
  0x26   : > { %p1186_p11 = pneg %p1185_p10 }
  0x28   : > { %p1191_p5 = pnand %p1190_p6, %p1186_p11 }
  0x2a   : > { %1194 = shalt.err (!%p1191_p5)
}
  0x2b   : > { %1028 = dma.hbm_to_vmem [thread:$0]  (!%p1414_p8), %s205_s7, 128, %s207_s9, %s194_s11  }
  0x2c   : > { %215 = sbr.rel (%p1353_p3) target bundleno = 1028 (0x404), region = 36  ;;  %s1431_s26 = sand.u32 (!%p1353_p3), 1, %s1276_s16  }
  0x2d   : > { %s947_s5 = sshll.u32 (!%p1353_p3), %s1431_s26, 3  ;;  %s218_s6 = scalar_lea.sflag (!%p1353_p3), [#allocation4], %s1431_s26 }
  0x2e   : > { %s221_s8 = scalar_lea.vmem (!%p1353_p3), [#allocation3], %s947_s5 }
  0x31   : > { %1255 = dma.done.wait (%p1396_p12), %s218_s6, 128  }
  0x32   : > { %1257 = vsyncadd (%p1396_p12), %s218_s6, 4294967168 }
  0x33   : > { %1259 = dma.done.wait (%p43_p1), [#allocation7], 576  }
  0x34   : > { %1261 = vsyncadd (%p43_p1), [#allocation7], 4294966720 }
  0x35   : > { %1263 = dma.done.wait (%p43_p1), [#allocation10], 64  }
  0x36   : > { %1265 = vsyncadd (%p43_p1), [#allocation10], 4294967232  ;;  %v1449_v0 = vld [vmem:[%s221_s8] sm:$0xff]  ;;  %s1291_s23 = smov 1   ;;  %s1292_s24 = smov 127   ;;  %v273_v25 = vlaneseq  ;;  %vm286_vm4 = vcmask 1043456  }
  0x37   : > { %264 = vst [vmem:[#allocation1] ss:$2 sm:$0xff] %v1449_v0  ;;  %s1293_s7 = smov 113   ;;  %s1294_s9 = smov 112   ;;  %vm494_vm9 = vcmask 588800  }
  0x38   : > { %s1295_s10 = smov 111   ;;  %s1296_s11 = smov 15   ;;  %v463_v28 = vld [vmem:[#allocation6 + $0x10] ss:$8 sm:$0x3]  ;;  %v1480_v29 = vand.u32 127, %v273_v25 }
  0x39   : > { %s1297_s12 = smov 17   ;;  %s1298_s13 = smov 16   ;;  %v438_v30 = vld [vmem:[#allocation6 + $0x7] ss:$8 sm:$0x3]  ;;  %v465_v32 = vperm.slane %v463_v28, 0 }
  0x3a   : > { %vm434_vm0 = vcmp.lt.s32.totalorder %v1480_v29, 112  ;;  %vm459_vm1 = vcmp.lt.s32.totalorder %v1480_v29, 111  ;;  %v466_v33 = vperm.slane %v463_v28, 1  ;;  %vm384_vm2 = vcmp.lt.s32.totalorder %v1480_v29, 127  ;;  %s962_s19 = sshll.u32 %s1348_s22, 3  ;;  %s261_s30 = scalar_lea.vmem [#allocation11], %s947_s5 }
  0x3b   : > { %v413_v34 = vld [vmem:[#allocation6 + $0x6] ss:$8 sm:$0x3]  ;;  %vm409_vm3 = vcmp.lt.s32.totalorder %v1480_v29, 113  ;;  %v440_v35 = vperm.slane %v438_v30, 0  ;;  %v441_v36 = vperm.slane %v438_v30, 1  ;;  %s833_s29 = scalar_lea.hbm %s1661_s4, %s962_s19 }
  0x3c   : > { %v388_v39 = vld [vmem:[#allocation6 + $0x5] ss:$8 sm:$0x3]  ;;  %v415_v44 = vperm.slane %v413_v34, 0  ;;  %v416_v45 = vperm.slane %v413_v34, 1  ;;  %vm350_vm5 = vcmp.lt.s32.totalorder %v1480_v29, 1 }
  0x3d   : > { %v354_v50 = vld [vmem:[#allocation6 + $0x3] ss:$8 sm:$0x3]  ;;  %v390_v51 = vperm.slane %v388_v39, 0  ;;  %v391_v52 = vperm.slane %v388_v39, 1  ;;  %vm325_vm6 = vcmp.lt.s32.totalorder %v1480_v29, 15 }
  0x3e   : > { %v265_v1 = vld.sshfl [vmem:[#allocation1] sm:$0xff pattern:$0x75316420]  ;;  %v266_v2 = vld.sshfl [vmem:[#allocation1 + $0x8] sm:$0xff pattern:$0x75316420] }
  0x3f   : > { %291 = vst [vmem:[#allocation1] ss:$2 sm:$0xff] %v1449_v0  ;;  %v356_v60 = vperm.slane %v354_v50, 0  ;;  %v329_v61 = vld [vmem:[#allocation6 + $0x2] ss:$8 sm:$0x3] }
  0x40   : > { %v357_v62 = vperm.slane %v354_v50, 1  ;;  %vm300_vm7 = vcmp.lt.s32.totalorder %v1480_v29, 16  ;;  %vm275_vm8 = vcmp.lt.s32.totalorder %v1480_v29, 17  ;;  %s835_s6 = sshll.u32 %s261_s30, 4  ;;  %s837_s8 = sshll.u32 %s833_s29, 4  ;;  %s836_s6 = int_to_ptr.vmem [resolvable:$true] %s835_s6  ;;  %s838_s8 = int_to_ptr.hbm [resolvable:$true] %s837_s8 }
  0x41   : > { %s822_s22 = scalar_lea.sflag [#allocation5], %s1431_s26  ;;  %s1230_s5 = scalar_lea.hbm %s1661_s4, 16 }
  0x46   : > { %v292_v3 = vld.sshfl [vmem:[#allocation1] sm:$0xff pattern:$0x75316420]  ;;  %v293_v4 = vld.sshfl [vmem:[#allocation1 + $0x8] sm:$0xff pattern:$0x75316420] }
  0x47   : > { %316 = vst [vmem:[#allocation1] ss:$2 sm:$0xff] %v1449_v0 }
  0x4e   : > { %v317_v5 = vld.sshfl [vmem:[#allocation1] sm:$0xff pattern:$0x75316420]  ;;  %v318_v6 = vld.sshfl [vmem:[#allocation1 + $0x8] sm:$0xff pattern:$0x75316420] }
  0x4f   : > { %341 = vst [vmem:[#allocation1] ss:$2 sm:$0xff] %v1449_v0 }
  0x56   : > { %v343_v7 = vld.sshfl [vmem:[#allocation1 + $0x8] sm:$0xff pattern:$0x75316420]  ;;  %v342_v8 = vld.sshfl [vmem:[#allocation1] sm:$0xff pattern:$0x75316420] }
  0x57   : > { %348 = vrot.lane.b32.xlu0 %v343_v7, %s1291_s23  ;;  %366 = vst [vmem:[#allocation1] ss:$2 sm:$0xff] %v1449_v0  ;;  %346 = vrot.lane.b32.xlu2 %v342_v8, %s1291_s23  ;;  %v332_v7 = vperm.slane %v329_v61, 1 }
  0x5e   : > { %v1458_v9 = vld.sshfl [vmem:[#allocation1] sm:$0xff pattern:$0x75316420]  ;;  %v1460_v10 = vld.sshfl [vmem:[#allocation1 + $0x8] sm:$0xff pattern:$0x75316420] }
  0x5f   : > { %375 = vst [vmem:[#allocation1] ss:$2 sm:$0xff] %v1449_v0 }
  0x66   : > { %v377_v11 = vld.sshfl [vmem:[#allocation1 + $0x8] sm:$0xff pattern:$0x75316420]  ;;  %v376_v12 = vld.sshfl [vmem:[#allocation1] sm:$0xff pattern:$0x75316420] }
  0x67   : > { %382 = vrot.lane.b32.xlu1 %v377_v11, %s1292_s24  ;;  %380 = vrot.lane.b32.xlu0 %v376_v12, %s1292_s24  ;;  %400 = vst [vmem:[#allocation1] ss:$2 sm:$0xff] %v1449_v0 }
  0x6e   : > { %v401_v13 = vld.sshfl [vmem:[#allocation1] sm:$0xff pattern:$0x75316420]  ;;  %v402_v14 = vld.sshfl [vmem:[#allocation1 + $0x8] sm:$0xff pattern:$0x75316420] }
  0x6f   : > { %425 = vst [vmem:[#allocation1] ss:$2 sm:$0xff] %v1449_v0  ;;  %405 = vrot.lane.b32.xlu2 %v401_v13, %s1293_s7  ;;  %v278_v13 = vld [vmem:[#allocation6] ss:$8 sm:$0x3] }
  0x76   : > { %v426_v15 = vld.sshfl [vmem:[#allocation1] sm:$0xff pattern:$0x75316420]  ;;  %v427_v16 = vld.sshfl [vmem:[#allocation1 + $0x8] sm:$0xff pattern:$0x75316420] }
  0x77   : > { %430 = vrot.lane.b32.xlu1 %v426_v15, %s1294_s9  ;;  %450 = vst [vmem:[#allocation1] ss:$2 sm:$0xff] %v1449_v0  ;;  %407 = vrot.lane.b32.xlu2 %v402_v14, %s1293_s7 }
  0x7e   : > { %v451_v17 = vld.sshfl [vmem:[#allocation1] sm:$0xff pattern:$0x75316420]  ;;  %v452_v18 = vld.sshfl [vmem:[#allocation1 + $0x8] sm:$0xff pattern:$0x75316420] }
  0x7f   : > { %432 = vrot.lane.b32.xlu1 %v427_v16, %s1294_s9  ;;  %455 = vrot.lane.b32.xlu0 %v451_v17, %s1295_s10 }
  0x80   : > { %323 = vrot.lane.b32.xlu2 %v318_v6, %s1296_s11  ;;  %v331_v6 = vperm.slane %v329_v61, 0 }
  0x87   : > { %321 = vrot.lane.b32.xlu1 %v317_v5, %s1296_s11  ;;  %457 = vrot.lane.b32.xlu0 %v452_v18, %s1295_s10  ;;  %v304_v5 = vld [vmem:[#allocation6 + $0x1] ss:$8 sm:$0x3] }
  0x88   : > { %269 = vrot.lane.b32.xlu2 %v265_v1, %s1297_s12  ;;  %v306_v16 = vperm.slane %v304_v5, 0  ;;  %v307_v17 = vperm.slane %v304_v5, 1 }
  0x8f   : > { %298 = vrot.lane.b32.xlu1 %v293_v4, %s1298_s13  ;;  %296 = vrot.lane.b32.xlu0 %v292_v3, %s1298_s13 }
  0x97   : > { %271 = vrot.lane.b32.xlu0 %v266_v2, %s1297_s12 }
  0xb1   : > { %v347_v21 = vpop.permute.xlu2 %346 }
  0xc9   : > { %v349_v19 = vpop.permute.xlu0 %348  ;;  %v406_v24 = vpop.permute.xlu2 %405 }
  0xca   : > { %v351_v3 = vsel %vm350_vm5, %v347_v21, %v349_v19  ;;  %v352_v4 = vsel %vm350_vm5, %v349_v19, %v347_v21 }
  0xcb   : > { %v360_v14 = vmul.f32 %v356_v60, %v352_v4  ;;  %v361_v15 = vmul.f32 %v357_v62, %v351_v3 }
  0xd1   : > { %v408_v31 = vpop.permute.xlu2 %407 }
  0xd2   : > { %v410_v48 = vsel %vm409_vm3, %v406_v24, %v408_v31  ;;  %v411_v49 = vsel %vm409_vm3, %v408_v31, %v406_v24  ;;  %v475_v31 = vld [vmem:[#allocation8] sm:$0xf] }
  0xd3   : > { %v419_v57 = vmul.f32 %v415_v44, %v410_v48  ;;  %v420_v58 = vmul.f32 %v416_v45, %v411_v49 }
  0xd9   : > { %v383_v20 = vpop.permute.xlu1 %382  ;;  %v381_v22 = vpop.permute.xlu0 %380 }
  0xda   : > { %v385_v55 = vsel %vm384_vm2, %v381_v22, %v383_v20  ;;  %v386_v56 = vsel %vm384_vm2, %v383_v20, %v381_v22  ;;  %v324_v59 = vpop.permute.xlu2 %323 }
  0xdb   : > { %v394_v63 = vmul.f32 %v390_v51, %v385_v55  ;;  %v395_v1 = vmul.f32 %v391_v52, %v386_v56 }
  0xe2   : > { %v270_v22 = vpop.permute.xlu2 %269 }
  0xe9   : > { %v431_v23 = vpop.permute.xlu1 %430 }
  0xf1   : > { %v433_v26 = vpop.permute.xlu1 %432  ;;  %v456_v27 = vpop.permute.xlu0 %455 }
  0xf2   : > { %v435_v40 = vsel %vm434_vm0, %v431_v23, %v433_v26  ;;  %v436_v41 = vsel %vm434_vm0, %v433_v26, %v431_v23  ;;  %v280_v23 = vperm.slane %v278_v13, 0 }
  0xf3   : > { %v444_v53 = vmul.f32 %v440_v35, %v435_v40  ;;  %v445_v54 = vmul.f32 %v441_v36, %v436_v41 }
  0xf9   : > { %v322_v37 = vpop.permute.xlu1 %321  ;;  %v458_v38 = vpop.permute.xlu0 %457 }
  0xfa   : > { %v460_v42 = vsel %vm459_vm1, %v456_v27, %v458_v38  ;;  %v461_v43 = vsel %vm459_vm1, %v458_v38, %v456_v27  ;;  %v326_v11 = vsel %vm325_vm6, %v322_v37, %v324_v59  ;;  %v327_v12 = vsel %vm325_vm6, %v324_v59, %v322_v37 }
  0xfb   : > { %v469_v46 = vmul.f32 %v465_v32, %v460_v42  ;;  %v470_v47 = vmul.f32 %v466_v33, %v461_v43  ;;  %v335_v20 = vmul.f32 %v331_v6, %v327_v12  ;;  %v336_v21 = vmul.f32 %v332_v7, %v326_v11  ;;  %v690_v12 = vld [vmem:[#allocation6 + $0x7] ss:$8 sm:$0x3] }
  0xfd   : > { %963 = vmatpush.msk.msra.mxu0 %vm286_vm4, %v469_v46  ;;  %972 = vmatpush.msk.msra.mxu1 %vm286_vm4, %v470_v47 }
  0xff   : > { %964 = vmatpush.msk.msra.mxu0 %vm286_vm4, %v444_v53  ;;  %973 = vmatpush.msk.msra.mxu1 %vm286_vm4, %v445_v54 }
 0x101   : > { %965 = vmatpush.msk.msra.mxu0 %vm286_vm4, %v419_v57  ;;  %974 = vmatpush.msk.msra.mxu1 %vm286_vm4, %v420_v58  ;;  %v297_v2 = vpop.permute.xlu0 %296  ;;  %v299_v8 = vpop.permute.xlu1 %298 }
 0x102   : > { %v301_v18 = vsel %vm300_vm7, %v297_v2, %v299_v8  ;;  %v302_v19 = vsel %vm300_vm7, %v299_v8, %v297_v2 }
 0x103   : > { %966 = vmatpush.msk.msra.mxu0 %vm286_vm4, %v394_v63  ;;  %975 = vmatpush.msk.msra.mxu1 %vm286_vm4, %v395_v1  ;;  %v310_v24 = vmul.f32 %v306_v16, %v302_v19  ;;  %v311_v25 = vmul.f32 %v307_v17, %v301_v18  ;;  %v708_v1 = vld [vmem:[#allocation6 + $0x10] ss:$8 sm:$0x3] }
 0x104   : > { %v710_v2 = vperm.slane %v708_v1, 0  ;;  %v711_v3 = vperm.slane %v708_v1, 1  ;;  %v578_v1 = vld [vmem:[#allocation6] ss:$8 sm:$0x3] }
 0x105   : > { %967 = vmatpush.msk.msra.mxu0 %vm286_vm4, %v1458_v9  ;;  %976 = vmatpush.msk.msra.mxu1 %vm286_vm4, %v1460_v10  ;;  %v281_v9 = vperm.slane %v278_v13, 1  ;;  %v692_v13 = vperm.slane %v690_v12, 0 }
 0x107   : > { %968 = vmatpush.msk.msra.mxu0 %vm286_vm4, %v360_v14  ;;  %977 = vmatpush.msk.msra.mxu1 %vm286_vm4, %v361_v15  ;;  %v693_v14 = vperm.slane %v690_v12, 1  ;;  %v720_v12 = vld [vmem:[#allocation9] sm:$0xf] }
 0x109   : > { %969 = vmatpush.msk.msra.mxu0 %vm286_vm4, %v335_v20  ;;  %978 = vmatpush.msk.msra.mxu1 %vm286_vm4, %v336_v21  ;;  %v272_v10 = vpop.permute.xlu0 %271  ;;  %v672_v20 = vld [vmem:[#allocation6 + $0x6] ss:$8 sm:$0x3] }
 0x10a   : > { %v276_v26 = vsel %vm275_vm8, %v270_v22, %v272_v10  ;;  %v277_v27 = vsel %vm275_vm8, %v272_v10, %v270_v22  ;;  %v674_v21 = vperm.slane %v672_v20, 0  ;;  %v675_v22 = vperm.slane %v672_v20, 1 }
 0x10b   : > { %v284_v28 = vmul.f32 %v280_v23, %v277_v27  ;;  %v285_v30 = vmul.f32 %v281_v9, %v276_v26  ;;  %970 = vmatpush.msk.msra.mxu0 %vm286_vm4, %v310_v24  ;;  %979 = vmatpush.msk.msra.mxu1 %vm286_vm4, %v311_v25  ;;  %v654_v27 = vld [vmem:[#allocation6 + $0x5] ss:$8 sm:$0x3] }
 0x10d   : > { %971 = vmatpush.msk.msra.mxu0 %vm286_vm4, %v284_v28  ;;  %980 = vmatpush.msk.msra.mxu1 %vm286_vm4, %v285_v30  ;;  %v656_v28 = vperm.slane %v654_v27, 0  ;;  %v657_v30 = vperm.slane %v654_v27, 1 }
 0x10e   : > { %952 = vmatmul.msk.f32.vlgmr.msra.gmra.mxu0 %vm494_vm9, %v475_v31  ;;  %953 = vmatmul.msk.f32.vlgmr.msra.gmra.mxu1 %vm494_vm9, %v475_v31 }
 0x18b   : > { %v515_v32 = vpop.f32.mrf.mxu0  ;;  %v535_v33 = vpop.f32.mrf.mxu1 }
 0x18c   : > { %v538_v34 = vsel %vm286_vm4, %v515_v32, 0.0  ;;  %v544_v35 = vmul.f32 %v515_v32, %v515_v32  ;;  %v539_v36 = vsel %vm286_vm4, %v535_v33, 0.0  ;;  %v545_v37 = vmul.f32 %v535_v33, %v535_v33 }
 0x18d   : > { %v540_v38 = vadd.f32 %v539_v36, %v538_v34 }
 0x18e   : > { %v546_v39 = vsel %vm286_vm4, %v544_v35, 0.0  ;;  %v547_v40 = vsel %vm286_vm4, %v545_v37, 0.0 }
 0x18f   : > { %541 = vadd.xlane.f32.xlu1 %v540_v38  ;;  %v548_v41 = vadd.f32 %v547_v40, %v546_v39  ;;  %v632_v38 = vld [vmem:[#allocation6 + $0x3] ss:$8 sm:$0x3]  ;;  %v614_v39 = vld [vmem:[#allocation6 + $0x2] ss:$8 sm:$0x3] }
 0x191   : > { %549 = vadd.xlane.f32.xlu2 %v548_v41 }
 0x202   : > { %v542_v42 = vpop.xlane.xlu1 %541 }
 0x203   : > { %v543_v43 = vmul.f32 0.00390625, %v542_v42  ;;  %v634_v42 = vperm.slane %v632_v38, 0 }
 0x204   : > { %v550_v44 = vpop.xlane.xlu2 %549 }
 0x205   : > { %v551_v45 = vmul.f32 0.00390625, %v550_v44  ;;  %v552_v46 = vmul.f32 %v543_v43, %v543_v43  ;;  %v555_v56 = vsub.f32 %v515_v32, %v543_v43  ;;  %v556_v57 = vsub.f32 %v535_v33, %v543_v43 }
 0x206   : > { %v635_v43 = vperm.slane %v632_v38, 1  ;;  %v616_v44 = vperm.slane %v614_v39, 0 }
 0x207   : > { %v553_v47 = vsub.f32 %v551_v45, %v552_v46  ;;  %v617_v45 = vperm.slane %v614_v39, 1 }
 0x209   : > { %v554_v48 = vmax.f32 %v553_v47, 0.0 }
 0x20b   : > { %v557_v49 = vadd.f32 1e-05, %v554_v48 }
 0x20d   : > { %1086 = vrsqrt.f32 %v557_v49  ;;  %vm564_vm11 = vweird.f32 %v557_v49 }
 0x213   : > { %v1087_v50 = vpop.eup %1086 }
 0x214   : > { %v559_v51 = vmul.f32 %v1087_v50, %v557_v49  ;;  %vm565_vm10 = vweird.f32 %v1087_v50 }
 0x215   : > { %vm566_vm12 = vmor %vm564_vm11, %vm565_vm10 }
 0x216   : > { %v560_v52 = vmul.f32 %v1087_v50, %v559_v51 }
 0x218   : > { %v561_v53 = vmul.f32 0.5, %v560_v52 }
 0x21a   : > { %v562_v54 = vsub.f32 1.5, %v561_v53  ;;  %v596_v53 = vld [vmem:[#allocation6 + $0x1] ss:$8 sm:$0x3] }
 0x21c   : > { %v563_v55 = vmul.f32 %v1087_v50, %v562_v54 }
 0x21e   : > { %v567_v58 = vsel %vm566_vm12, %v1087_v50, %v563_v55 }
 0x21f   : > { %v568_v59 = vmul.f32 %v567_v58, %v555_v56  ;;  %v569_v60 = vmul.f32 %v567_v58, %v556_v57  ;;  %v598_v56 = vperm.slane %v596_v53, 0  ;;  %v599_v57 = vperm.slane %v596_v53, 1 }
 0x221   : > { %v570_v61 = vmax.f32 %v568_v59, 0.0  ;;  %v571_v62 = vmax.f32 %v569_v60, 0.0 }
 0x223   : > { %668 = vrot.lane.b32.xlu2 %v571_v62, %s1293_s7  ;;  %648 = vrot.lane.b32.xlu1 %v570_v61, %s1292_s24 }
 0x224   : > { %702 = vrot.lane.b32.xlu0 %v570_v61, %s1295_s10 }
 0x22b   : > { %608 = vrot.lane.b32.xlu2 %v570_v61, %s1296_s11  ;;  %610 = vrot.lane.b32.xlu1 %v571_v62, %s1296_s11 }
 0x22c   : > { %704 = vrot.lane.b32.xlu0 %v571_v62, %s1295_s10 }
 0x233   : > { %592 = vrot.lane.b32.xlu2 %v571_v62, %s1298_s13  ;;  %572 = vrot.lane.b32.xlu1 %v570_v61, %s1297_s12 }
 0x234   : > { %684 = vrot.lane.b32.xlu0 %v570_v61, %s1294_s9 }
 0x23c   : > { %686 = vrot.lane.b32.xlu0 %v571_v62, %s1294_s9 }
 0x244   : > { %666 = vrot.lane.b32.xlu0 %v570_v61, %s1293_s7 }
 0x24c   : > { %650 = vrot.lane.b32.xlu0 %v571_v62, %s1292_s24 }
 0x254   : > { %626 = vrot.lane.b32.xlu0 %v570_v61, %s1291_s23 }
 0x25c   : > { %628 = vrot.lane.b32.xlu0 %v571_v62, %s1291_s23  ;;  %s1224_s23 = sshra.s32 %s838_s8, 4  ;;  %s1225_s23 = int_to_ptr.hbm [resolvable:$true] %s1224_s23 }
 0x25d   : > { %s1226_s24 = scalar_lea.hbm %s1225_s23, 8  ;;  %p1231_p12 = scmp.lt.s32.totalorder %s1225_s23, %s1661_s4 }
 0x25e   : > { %p1227_p1 = scmp.ne.s32.totalorder %s1225_s23, %s1226_s24  ;;  %p1232_p8 = scmp.lt.s32.totalorder %s1230_s5, %s1226_s24 }
 0x260   : > { %p1228_p3 = pnand %p1227_p1, %p1400_p13  ;;  %p1233_p7 = por %p1232_p8, %p1231_p12 }
 0x262   : > { %p1229_p5 = pneg %p1228_p3 }
 0x264   : > { %590 = vrot.lane.b32.xlu0 %v570_v61, %s1298_s13  ;;  %p1234_p9 = pnand %p1233_p7, %p1229_p5 }
 0x26c   : > { %574 = vrot.lane.b32.xlu0 %v571_v62, %s1297_s12 }
 0x27d   : > { %v669_v23 = vpop.permute.xlu2 %668 }
 0x285   : > { %v609_v40 = vpop.permute.xlu2 %608 }
 0x28d   : > { %v593_v58 = vpop.permute.xlu2 %592 }
 0x295   : > { %v649_v31 = vpop.permute.xlu1 %648 }
 0x296   : > { %v703_v63 = vpop.permute.xlu0 %702 }
 0x29d   : > { %v611_v41 = vpop.permute.xlu1 %610 }
 0x29e   : > { %v705_v4 = vpop.permute.xlu0 %704  ;;  %v612_v47 = vsel %vm325_vm6, %v609_v40, %v611_v41  ;;  %v613_v48 = vsel %vm325_vm6, %v611_v41, %v609_v40 }
 0x29f   : > { %v706_v5 = vsel %vm459_vm1, %v703_v63, %v705_v4  ;;  %v707_v6 = vsel %vm459_vm1, %v705_v4, %v703_v63  ;;  %v620_v54 = vmul.f32 %v616_v44, %v613_v48  ;;  %v621_v55 = vmul.f32 %v617_v45, %v612_v47 }
 0x2a0   : > { %v714_v7 = vmul.f32 %v710_v2, %v706_v5  ;;  %v715_v8 = vmul.f32 %v711_v3, %v707_v6  ;;  %v580_v2 = vperm.slane %v578_v1, 0  ;;  %v581_v3 = vperm.slane %v578_v1, 1 }
 0x2a2   : > { %981 = vmatpush.msk.msra.mxu2 %vm286_vm4, %v714_v7  ;;  %990 = vmatpush.msk.msra.mxu3 %vm286_vm4, %v715_v8 }
 0x2a5   : > { %v573_v4 = vpop.permute.xlu1 %572 }
 0x2a6   : > { %v685_v11 = vpop.permute.xlu0 %684 }
 0x2ae   : > { %v687_v15 = vpop.permute.xlu0 %686 }
 0x2af   : > { %v688_v16 = vsel %vm434_vm0, %v685_v11, %v687_v15  ;;  %v689_v17 = vsel %vm434_vm0, %v687_v15, %v685_v11 }
 0x2b0   : > { %v696_v18 = vmul.f32 %v692_v13, %v688_v16  ;;  %v697_v19 = vmul.f32 %v693_v14, %v689_v17 }
 0x2b2   : > { %982 = vmatpush.msk.msra.mxu2 %vm286_vm4, %v696_v18  ;;  %991 = vmatpush.msk.msra.mxu3 %vm286_vm4, %v697_v19 }
 0x2b6   : > { %v667_v9 = vpop.permute.xlu0 %666 }
 0x2b7   : > { %v670_v24 = vsel %vm409_vm3, %v667_v9, %v669_v23  ;;  %v671_v25 = vsel %vm409_vm3, %v669_v23, %v667_v9 }
 0x2b8   : > { %v678_v10 = vmul.f32 %v674_v21, %v670_v24  ;;  %v679_v26 = vmul.f32 %v675_v22, %v671_v25 }
 0x2ba   : > { %983 = vmatpush.msk.msra.mxu2 %vm286_vm4, %v678_v10  ;;  %992 = vmatpush.msk.msra.mxu3 %vm286_vm4, %v679_v26 }
 0x2be   : > { %v651_v32 = vpop.permute.xlu0 %650 }
 0x2bf   : > { %v652_v33 = vsel %vm384_vm2, %v649_v31, %v651_v32  ;;  %v653_v34 = vsel %vm384_vm2, %v651_v32, %v649_v31 }
 0x2c0   : > { %v660_v35 = vmul.f32 %v656_v28, %v652_v33  ;;  %v661_v36 = vmul.f32 %v657_v30, %v653_v34 }
 0x2c2   : > { %984 = vmatpush.msk.msra.mxu2 %vm286_vm4, %v660_v35  ;;  %993 = vmatpush.msk.msra.mxu3 %vm286_vm4, %v661_v36 }
 0x2c4   : > { %985 = vmatpush.msk.msra.mxu2 %vm286_vm4, %v570_v61  ;;  %994 = vmatpush.msk.msra.mxu3 %vm286_vm4, %v571_v62 }
 0x2c6   : > { %v627_v37 = vpop.permute.xlu0 %626 }
 0x2ce   : > { %v629_v46 = vpop.permute.xlu0 %628 }
 0x2cf   : > { %v630_v49 = vsel %vm350_vm5, %v627_v37, %v629_v46  ;;  %v631_v50 = vsel %vm350_vm5, %v629_v46, %v627_v37 }
 0x2d0   : > { %v638_v51 = vmul.f32 %v634_v42, %v631_v50  ;;  %v639_v52 = vmul.f32 %v635_v43, %v630_v49 }
 0x2d2   : > { %986 = vmatpush.msk.msra.mxu2 %vm286_vm4, %v638_v51  ;;  %995 = vmatpush.msk.msra.mxu3 %vm286_vm4, %v639_v52 }
 0x2d4   : > { %987 = vmatpush.msk.msra.mxu2 %vm286_vm4, %v620_v54  ;;  %996 = vmatpush.msk.msra.mxu3 %vm286_vm4, %v621_v55 }
 0x2d6   : > { %v591_v59 = vpop.permute.xlu0 %590 }
 0x2d7   : > { %v594_v60 = vsel %vm300_vm7, %v591_v59, %v593_v58  ;;  %v595_v61 = vsel %vm300_vm7, %v593_v58, %v591_v59 }
 0x2d8   : > { %v602_v62 = vmul.f32 %v598_v56, %v595_v61  ;;  %v603_v63 = vmul.f32 %v599_v57, %v594_v60 }
 0x2da   : > { %988 = vmatpush.msk.msra.mxu2 %vm286_vm4, %v602_v62  ;;  %997 = vmatpush.msk.msra.mxu3 %vm286_vm4, %v603_v63 }
 0x2de   : > { %v575_v5 = vpop.permute.xlu0 %574 }
 0x2df   : > { %v576_v6 = vsel %vm275_vm8, %v573_v4, %v575_v5  ;;  %v577_v7 = vsel %vm275_vm8, %v575_v5, %v573_v4 }
 0x2e0   : > { %v584_v8 = vmul.f32 %v580_v2, %v577_v7  ;;  %v585_v11 = vmul.f32 %v581_v3, %v576_v6 }
 0x2e2   : > { %989 = vmatpush.msk.msra.mxu2 %vm286_vm4, %v584_v8  ;;  %998 = vmatpush.msk.msra.mxu3 %vm286_vm4, %v585_v11 }
 0x2e3   : > { %954 = vmatmul.msk.f32.vlgmr.msra.gmra.mxu2 %vm494_vm9, %v720_v12  ;;  %955 = vmatmul.msk.f32.vlgmr.msra.gmra.mxu3 %vm494_vm9, %v720_v12 }
 0x366   : > { %v759_v13 = vpop.f32.mrf.mxu2  ;;  %v779_v14 = vpop.f32.mrf.mxu3 }
 0x367   : > { %v782_v15 = vsel %vm286_vm4, %v759_v13, 0.0  ;;  %v788_v16 = vmul.f32 %v759_v13, %v759_v13  ;;  %v783_v17 = vsel %vm286_vm4, %v779_v14, 0.0  ;;  %v789_v29 = vmul.f32 %v779_v14, %v779_v14 }
 0x368   : > { %v784_v18 = vadd.f32 %v783_v17, %v782_v15 }
 0x369   : > { %v790_v19 = vsel %vm286_vm4, %v788_v16, 0.0  ;;  %v791_v20 = vsel %vm286_vm4, %v789_v29, 0.0 }
 0x36a   : > { %785 = vadd.xlane.f32.xlu2 %v784_v18  ;;  %v792_v21 = vadd.f32 %v791_v20, %v790_v19 }
 0x36c   : > { %793 = vadd.xlane.f32.xlu1 %v792_v21 }
 0x3dd   : > { %v786_v22 = vpop.xlane.xlu2 %785 }
 0x3de   : > { %v787_v23 = vmul.f32 0.00390625, %v786_v22 }
 0x3df   : > { %v794_v9 = vpop.xlane.xlu1 %793 }
 0x3e0   : > { %v795_v24 = vmul.f32 0.00390625, %v794_v9  ;;  %v796_v25 = vmul.f32 %v787_v23, %v787_v23  ;;  %v800_v35 = vsub.f32 %v779_v14, %v787_v23  ;;  %v799_v37 = vsub.f32 %v759_v13, %v787_v23 }
 0x3e2   : > { %v797_v10 = vsub.f32 %v795_v24, %v796_v25 }
 0x3e4   : > { %v798_v26 = vmax.f32 %v797_v10, 0.0 }
 0x3e6   : > { %v801_v27 = vadd.f32 1e-05, %v798_v26 }
 0x3e8   : > { %1088 = vrsqrt.f32 %v801_v27  ;;  %vm808_vm14 = vweird.f32 %v801_v27 }
 0x3ee   : > { %v1089_v28 = vpop.eup %1088 }
 0x3ef   : > { %v803_v30 = vmul.f32 %v1089_v28, %v801_v27  ;;  %vm809_vm13 = vweird.f32 %v1089_v28 }
 0x3f0   : > { %vm810_vm15 = vmor %vm808_vm14, %vm809_vm13 }
 0x3f1   : > { %v804_v31 = vmul.f32 %v1089_v28, %v803_v30 }
 0x3f3   : > { %v805_v32 = vmul.f32 0.5, %v804_v31 }
 0x3f5   : > { %v806_v33 = vsub.f32 1.5, %v805_v32 }
 0x3f7   : > { %v807_v34 = vmul.f32 %v1089_v28, %v806_v33 }
 0x3f9   : > { %v811_v36 = vsel %vm810_vm15, %v1089_v28, %v807_v34 }
 0x3fa   : > { %v813_v38 = vmul.f32 %v811_v36, %v800_v35  ;;  %v812_v39 = vmul.f32 %v811_v36, %v799_v37 }
 0x3fc   : > { %v816_v40 = vrot.slane %v813_v38, 4 }
 0x3fe   : > { %v817_v41 = vsel %vm286_vm4, %v812_v39, %v816_v40 }
 0x3ff   : > { %v819_v42 = vadd.f32 %v817_v41, %v1449_v0 }
 0x401   : > { %820 = vst [vmem:[%s261_s30] sm:$0xff] %v819_v42 }
 0x402   : > { %1237 = shalt.err (!%p1234_p9)
}
 0x403   : > { %1013 = dma.vmem_to_hbm [thread:$0]  (%p1400_p13), %s836_s6, 128, %s838_s8, %s822_s22  }
 0x404 PF: > { %s849_s26 = sand.u32 1, %s1272_s15   ;;  %p1668_p10 = scmp.ge.s32.totalorder %s1284_s18, 2 }
 0x405   : > { %s850_s12 = scalar_lea.sflag [#allocation5], %s849_s26 }
 0x406   : > { %p1030_p11 = pnand %p1668_p10, %p1405_p4 }
 0x408   : > { %p1031_p0 = pneg %p1030_p11 }
 0x40a   : > { %1267 = dma.done.wait (%p1031_p0), %s850_s12, 128  }
 0x40b   : > { %1269 = vsyncadd (%p1031_p0), %s850_s12, 4294967168  ;;  %p19_p2 = scmp.ge.s32.totalorder %s1380_s14, 4   ;;  %s1669_s15 = smov %s1276_s16 }
 0x40c   : > { %s1670_s16 = smov %s1280_s17  ;;  %s1671_s17 = smov %s1392_s21 }
 0x40d   : > { %s1672_s18 = smov %s1380_s14  ;;  %21 = sbr.rel (!%p19_p2) target bundleno = 7 (0x7), region = 100 }
 0x412   :  { %856 = vsyncpa [#allocation4], 1 }
 0x413   :  { %858 = vsyncpa [#allocation4 + $0x1], 1 }
 0x414   :  { %859 = vsyncpa [#allocation7], 1 }
 0x415   :  { %860 = vsyncpa [#allocation10], 1 }
 0x416   :  { %861 = vsyncpa [#allocation5], 1 }
 0x417   :  { %863 = vsyncpa [#allocation5 + $0x1], 1 }

</bundles_post_ra>
